<compile_context>
chip_gen: v7x
topology: tpu7x:2x2x1
jax: 0.10.0
libtpu: 0.0.40
codegen_flags: <defaults>
</compile_context>

<pallas_src>
import functools

import jax
import jax.numpy as jnp
from jax.experimental import pallas as pl
from jax.experimental.pallas import tpu as pltpu


def _upconv_kernel(x_ref, t1_ref, t2_ref, sb_ref, o_ref, xpad_ref, hpad_ref,
                   *, K, H, W, Cin, Cout, pe, B, has_shortcut):
    """Fully fused UpConv forward for one batch tile.

    refs:
      x_ref    : (B, H, W*Cin)            bf16 lane-dense input slab
      t1_ref   : (K, W*Cin, ncol1)        bf16 block-Toeplitz RHS for conv1
                                          (ncol1 = W*Cout, or 2*W*Cout with fused shortcut)
      t2_ref   : (K, W*Cout, W*Cout)      bf16 block-Toeplitz RHS for conv2
      sb_ref   : (4|6, W*Cout)            fp32 folded BN scale/shift, pre-tiled per lane
      o_ref    : (B, H, W*Cout)           fp32 lane-dense output slab
      xpad_ref : (B, Hp, W*Cin)           bf16 VMEM scratch (H-padded input)
      hpad_ref : (B, Hp, W*Cout)          bf16 VMEM scratch (H-padded intermediate h)
    """
    BH = B * H
    Wci = W * Cin
    Wco = W * Cout
    sb = sb_ref[...]                                        # (rows, W*Cout) fp32

    # ---- stage H-padded input (bf16 scratch; only the 2*pe halo rows need zeros,
    #      the interior is fully overwritten every grid step) ----
    if pe > 0:
        xpad_ref[:, :pe, :] = jnp.zeros((B, pe, Wci), jnp.bfloat16)
        xpad_ref[:, pe + H:, :] = jnp.zeros((B, pe, Wci), jnp.bfloat16)
    xpad_ref[:, pe:pe + H, :] = x_ref[...]

    # ---- ConvTranspose2d #1 (+ fused 1x1 shortcut columns): K row-Toeplitz matmuls,
    #      output lane dim = W*Cout (or 2*W*Cout) -> full MXU lane occupancy ----
    ncol1 = t1_ref.shape[-1]
    acc1 = jnp.zeros((BH, ncol1), jnp.float32)
    for ky in range(K):                                     # static unroll (K small)
        lhs = xpad_ref[:, ky:ky + H, :].reshape(BH, Wci)
        acc1 = acc1 + jnp.dot(lhs, t1_ref[ky], preferred_element_type=jnp.float32)

    # BN1 + ReLU (Dropout eval-mode = identity), lane-dense fp32 epilogue.
    h = jnp.maximum(acc1[:, :Wco] * sb[0:1, :] + sb[1:2, :], 0.0)

    # ---- ConvTranspose2d #2 + BN + ReLU; h never leaves VMEM ----
    if pe > 0:
        hpad_ref[:, :pe, :] = jnp.zeros((B, pe, Wco), jnp.bfloat16)
        hpad_ref[:, pe + H:, :] = jnp.zeros((B, pe, Wco), jnp.bfloat16)
    hpad_ref[:, pe:pe + H, :] = h.reshape(B, H, Wco).astype(jnp.bfloat16)

    acc2 = jnp.zeros((BH, Wco), jnp.float32)
    for ky in range(K):
        lhs = hpad_ref[:, ky:ky + H, :].reshape(BH, Wco)
        acc2 = acc2 + jnp.dot(lhs, t2_ref[ky], preferred_element_type=jnp.float32)

    out = jnp.maximum(acc2 * sb[2:3, :] + sb[3:4, :], 0.0)

    if has_shortcut:
        # 1x1 ConvT + BN shortcut rode along as conv1's extra output columns.
        out = out + (acc1[:, Wco:] * sb[4:5, :] + sb[5:6, :])

    o_ref[...] = out.reshape(B, H, Wco).astype(o_ref.dtype)  # lane-dense store


def _prep_flipped(w):
    """PyTorch ConvTranspose2d weight (Cin, Cout, K, K) -> flipped regular-conv weight
    (K, K, Cin, Cout) for the equivalent stride-1 correlation with padding K-1-p."""
    return jnp.transpose(w[:, :, ::-1, ::-1], (2, 3, 0, 1))


def _toeplitz_rhs(wf, W, pe):
    """Flipped weight (K, K, Cin, Cout) -> block-Toeplitz RHS (K, W*Cin, W*Cout).

    T[ky, xin*Cin+ci, x*Cout+co] = wf[ky, xin-x+pe, ci, co] when 0 <= xin-x+pe < K, else 0.
    W-direction zero padding is implicit (out-of-range taps simply have no row)."""
    K, _, Cin, Cout = wf.shape
    xin = jnp.arange(W)[:, None]
    xout = jnp.arange(W)[None, :]
    kx = xin - xout + pe                                    # (Win, Wout)
    valid = (kx >= 0) & (kx < K)
    g = jnp.take(wf, jnp.clip(kx, 0, K - 1), axis=1)        # (K, Win, Wout, Cin, Cout)
    g = jnp.where(valid[None, :, :, None, None], g, 0.0)
    g = jnp.transpose(g, (0, 1, 3, 2, 4))                   # (K, Win, Cin, Wout, Cout)
    return g.reshape(K, W * Cin, W * Cout)


def _fold_bn(bias, bn, eps=1e-5):
    scale = bn["gamma"] / jnp.sqrt(bn["var"] + eps)
    shift = bn["beta"] - bn["mean"] * scale + bias * scale   # conv bias folded in
    return scale.astype(jnp.float32), shift.astype(jnp.float32)


def upconv_forward(x_nchw, p, n_input, n_output, kernel_size=3, stride=1, batch_tile=None):
    assert stride == 1, "only the default stride=1 / dilation=1 / output_padding=0 config is implemented"
    N, Cin, H, W = x_nchw.shape
    assert Cin == n_input
    Cout = n_output
    K = kernel_size
    padding = K // 2
    pe = K - 1 - padding                 # effective padding of the equivalent regular conv
    assert pe >= 0, "padding > kernel_size-1 not supported"
    Hp = H + 2 * pe
    Wci, Wco = W * Cin, W * Cout
    has_shortcut = (n_input != n_output) or (stride != 1)

    # Batch tiling: collapse the grid for small N (single-TC v5e/v6e); for larger N on
    # v7x pick batch_tile so each core gets >=2 parallel steps within its VMEM budget.
    B_tile = N if batch_tile is None else batch_tile
    assert N % B_tile == 0

    # Lane-dense bf16 input slab: NCHW -> (N, H, W*Cin).
    x2d = jnp.transpose(x_nchw, (0, 2, 3, 1)).reshape(N, H, Wci).astype(jnp.bfloat16)

    # Host-built block-Toeplitz RHS matrices (output lane dim = W*Cout).
    T1 = _toeplitz_rhs(_prep_flipped(p["w1"]), W, pe)        # (K, W*Cin, W*Cout)
    T2 = _toeplitz_rhs(_prep_flipped(p["w2"]), W, pe)        # (K, W*Cout, W*Cout)

    s1, t1 = _fold_bn(p["b1"], p["bn1"])
    s2, t2 = _fold_bn(p["b2"], p["bn2"])
    rows = [s1, t1, s2, t2]
    if has_shortcut:
        # Fold the 1x1 ConvT shortcut into conv1: wu becomes W*Cout extra RHS columns,
        # nonzero only at the center tap ky == pe, block-diagonal over x.
        wu = p["wu"][:, :, 0, 0]                             # (Cin, Cout)
        S = jnp.zeros((K, Wci, Wco), T1.dtype).at[pe].set(
            jnp.kron(jnp.eye(W, dtype=wu.dtype), wu))
        T1 = jnp.concatenate([T1, S], axis=-1)               # (K, W*Cin, 2*W*Cout)
        su, tu = _fold_bn(p["bu"], p["bnu"])
        rows += [su, tu]
    T1 = T1.astype(jnp.bfloat16)
    T2 = T2.astype(jnp.bfloat16)
    # BN scale/shift rows pre-tiled to the lane-dense (x*Cout + co) layout.
    sb = jnp.stack([jnp.tile(r, W) for r in rows]).astype(jnp.float32)  # (4|6, W*Cout)

    # Rough VMEM guard: double-buffered I/O blocks + weights + scratch + live fp32.
    vmem_est = (2 * B_tile * H * Wci * 2 + 2 * B_tile * H * Wco * 4
                + T1.size * 2 + T2.size * 2 + sb.size * 4
                + B_tile * Hp * Wci * 2 + B_tile * Hp * Wco * 2
                + 4 * B_tile * H * (Wco + T1.shape[-1]) * 4)
    assert vmem_est < 24 * 1024 * 1024, "tile too large for VMEM; pass a smaller batch_tile"

    kernel = functools.partial(
        _upconv_kernel, K=K, H=H, W=W, Cin=Cin, Cout=Cout, pe=pe, B=B_tile,
        has_shortcut=has_shortcut)

    out = pl.pallas_call(
        kernel,
        out_shape=jax.ShapeDtypeStruct((N, H, Wco), jnp.float32),
        grid=(N // B_tile,),
        in_specs=[
            pl.BlockSpec((B_tile, H, Wci), lambda n: (n, 0, 0)),
            pl.BlockSpec(T1.shape, lambda n: (0, 0, 0)),
            pl.BlockSpec(T2.shape, lambda n: (0, 0, 0)),
            pl.BlockSpec(sb.shape, lambda n: (0, 0)),
        ],
        out_specs=pl.BlockSpec((B_tile, H, Wco), lambda n: (n, 0, 0)),
        scratch_shapes=[pltpu.VMEM((B_tile, Hp, Wci), jnp.bfloat16),
                        pltpu.VMEM((B_tile, Hp, Wco), jnp.bfloat16)],
        compiler_params=pltpu.CompilerParams(dimension_semantics=("parallel",)),
    )(x2d, T1, T2, sb)

    return jnp.transpose(out.reshape(N, H, W, Cout), (0, 3, 1, 2))   # NHWC -> NCHW


def init_upconv_params(key, n_input, n_output, kernel_size=3):
    ks = jax.random.split(key, 9)

    def bn(k):
        k1, k2, k3, k4 = jax.random.split(k, 4)
        return dict(
            gamma=jax.random.uniform(k1, (n_output,), minval=0.5, maxval=1.5),
            beta=0.1 * jax.random.normal(k2, (n_output,)),
            mean=0.1 * jax.random.normal(k3, (n_output,)),
            var=jax.random.uniform(k4, (n_output,), minval=0.5, maxval=1.5),
        )

    p = {}
    p["w1"] = 0.2 * jax.random.normal(ks[0], (n_input, n_output, kernel_size, kernel_size))
    p["b1"] = 0.05 * jax.random.normal(ks[1], (n_output,))
    p["bn1"] = bn(ks[2])
    p["w2"] = 0.2 * jax.random.normal(ks[3], (n_output, n_output, kernel_size, kernel_size))
    p["b2"] = 0.05 * jax.random.normal(ks[4], (n_output,))
    p["bn2"] = bn(ks[5])
    p["wu"] = 0.2 * jax.random.normal(ks[6], (n_input, n_output, 1, 1))
    p["bu"] = 0.05 * jax.random.normal(ks[7], (n_output,))
    p["bnu"] = bn(ks[8])
    return p


# ---------------- pure-JAX reference (correctness check only) ----------------
def _bf16_round(a):
    # Match the kernel's bf16 MXU operands (fp32 accumulation).
    return a.astype(jnp.bfloat16).astype(jnp.float32)


def _ref_convt_bn(x, w, b, bn, kernel_size, padding, relu, eps=1e-5):
    K = kernel_size
    wf = jnp.transpose(w[:, :, ::-1, ::-1], (2, 3, 0, 1))          # (K,K,Cin,Cout) HWIO
    pad_eff = K - 1 - padding
    y = jax.lax.conv_general_dilated(
        _bf16_round(x), _bf16_round(wf), window_strides=(1, 1),
        padding=[(pad_eff, pad_eff), (pad_eff, pad_eff)],
        dimension_numbers=("NHWC", "HWIO", "NHWC"),
        preferred_element_type=jnp.float32)
    scale = bn["gamma"] / jnp.sqrt(bn["var"] + eps)
    shift = bn["beta"] - bn["mean"] * scale + b * scale
    y = y * scale + shift
    return jnp.maximum(y, 0.0) if relu else y


def upconv_forward_ref(x_nchw, p, n_input, n_output, kernel_size=3, stride=1):
    x = jnp.transpose(x_nchw, (0, 2, 3, 1))
    pad = kernel_size // 2
    h = _ref_convt_bn(x, p["w1"], p["b1"], p["bn1"], kernel_size, pad, True)
    out = _ref_convt_bn(h, p["w2"], p["b2"], p["bn2"], kernel_size, pad, True)
    if n_input != n_output or stride != 1:      # matches the PyTorch module exactly
        out = out + _ref_convt_bn(x, p["wu"], p["bu"], p["bnu"], 1, 0, False)
    return jnp.transpose(out, (0, 3, 1, 2))


if __name__ == "__main__":
    key = jax.random.PRNGKey(0)
    N, H, W = 2, 16, 16

    # Case 1: n_input != n_output  ->  1x1 ConvT+BN shortcut is present and added.
    n_input, n_output = 4, 8
    k_params, k_x, k_rest = jax.random.split(key, 3)
    params = init_upconv_params(k_params, n_input, n_output, kernel_size=3)
    x = jax.random.normal(k_x, (N, n_input, H, W), jnp.float32)    # NCHW like PyTorch

    y = jax.block_until_ready(upconv_forward(x, params, n_input, n_output))
    assert y.shape == (N, n_output, H, W), y.shape
    y_ref = upconv_forward_ref(x, params, n_input, n_output)
    assert jnp.allclose(y, y_ref, atol=5e-3, rtol=5e-3), float(jnp.max(jnp.abs(y - y_ref)))

    # Case 2: n_input == n_output  ->  no shortcut; module returns net(x) only.
    n_io = 8
    kp2, kx2 = jax.random.split(k_rest)
    params2 = init_upconv_params(kp2, n_io, n_io, kernel_size=3)
    x2 = jax.random.normal(kx2, (N, n_io, H, W), jnp.float32)
    y2 = jax.block_until_ready(upconv_forward(x2, params2, n_io, n_io))
    assert y2.shape == (N, n_io, H, W), y2.shape
    y2_ref = upconv_forward_ref(x2, params2, n_io, n_io)
    assert jnp.allclose(y2, y2_ref, atol=5e-3, rtol=5e-3), float(jnp.max(jnp.abs(y2 - y2_ref)))

    print("KERNEL_OK")
</pallas_src>

<mosaic_0001>
module attributes {stable_mosaic.version = 11 : i64} {
  func.func @_upconv_kernel(%arg0: i32, %arg1: memref<2x16x64xbf16, #tpu.memory_space<vmem>>, %arg2: memref<3x64x256xbf16, #tpu.memory_space<vmem>>, %arg3: memref<3x128x128xbf16, #tpu.memory_space<vmem>>, %arg4: memref<6x128xf32, #tpu.memory_space<vmem>>, %arg5: memref<2x16x128xf32, #tpu.memory_space<vmem>>, %arg6: memref<2x18x64xbf16, #tpu.memory_space<vmem>>, %arg7: memref<2x18x128xbf16, #tpu.memory_space<vmem>>) attributes {dimension_semantics = [#tpu.dimension_semantics<parallel>], iteration_bounds = array<i64: 1>, scalar_prefetch = 0 : i64, scratch_operands = 2 : i64, tpu.core_type = #tpu.core_type<tc>, window_params = [{transform_indices = @transform_0, window_bounds = array<i64: 2, 16, 64>}, {pipeline_mode = #tpu.pipeline_mode<synchronous>, transform_indices = @transform_1, window_bounds = array<i64: 3, 64, 256>}, {pipeline_mode = #tpu.pipeline_mode<synchronous>, transform_indices = @transform_2, window_bounds = array<i64: 3, 128, 128>}, {pipeline_mode = #tpu.pipeline_mode<synchronous>, transform_indices = @transform_3, window_bounds = array<i64: 6, 128>}, {transform_indices = @transform_4, window_bounds = array<i64: 2, 16, 128>}]} {
    %c0 = arith.constant 0 : index
    %c0_0 = arith.constant 0 : index
    %0 = vector.load %arg4[%c0, %c0_0] : memref<6x128xf32, #tpu.memory_space<vmem>>, vector<6x128xf32>
    %cst = arith.constant 0.000000e+00 : bf16
    %1 = vector.broadcast %cst : bf16 to vector<2x1x64xbf16>
    %c0_1 = arith.constant 0 : index
    %c0_2 = arith.constant 0 : index
    %c0_3 = arith.constant 0 : index
    %2 = vector.load %arg6[%c0_1, %c0_2, %c0_3] : memref<2x18x64xbf16, #tpu.memory_space<vmem>>, vector<2x1x64xbf16>
    tpu.vector_store %arg6[%c0_1, %c0_2, %c0_3], %1 {strides = array<i32>} : memref<2x18x64xbf16, #tpu.memory_space<vmem>>, vector<2x1x64xbf16>,
    %cst_4 = arith.constant 0.000000e+00 : bf16
    %3 = vector.broadcast %cst_4 : bf16 to vector<2x1x64xbf16>
    %c0_5 = arith.constant 0 : index
    %c17 = arith.constant 17 : index
    %c0_6 = arith.constant 0 : index
    %4 = vector.load %arg6[%c0_5, %c17, %c0_6] : memref<2x18x64xbf16, #tpu.memory_space<vmem>>, vector<2x1x64xbf16>
    tpu.vector_store %arg6[%c0_5, %c17, %c0_6], %3 {strides = array<i32>} : memref<2x18x64xbf16, #tpu.memory_space<vmem>>, vector<2x1x64xbf16>,
    %c0_7 = arith.constant 0 : index
    %c0_8 = arith.constant 0 : index
    %c0_9 = arith.constant 0 : index
    %5 = vector.load %arg1[%c0_7, %c0_8, %c0_9] : memref<2x16x64xbf16, #tpu.memory_space<vmem>>, vector<2x16x64xbf16>
    %c0_10 = arith.constant 0 : index
    %c1 = arith.constant 1 : index
    %c0_11 = arith.constant 0 : index
    %6 = vector.load %arg6[%c0_10, %c1, %c0_11] : memref<2x18x64xbf16, #tpu.memory_space<vmem>>, vector<2x16x64xbf16>
    tpu.vector_store %arg6[%c0_10, %c1, %c0_11], %5 {strides = array<i32>} : memref<2x18x64xbf16, #tpu.memory_space<vmem>>, vector<2x16x64xbf16>,
    %cst_12 = arith.constant 0.000000e+00 : f32
    %7 = vector.broadcast %cst_12 : f32 to vector<32x256xf32>
    %c0_13 = arith.constant 0 : index
    %c0_14 = arith.constant 0 : index
    %c0_15 = arith.constant 0 : index
    %8 = vector.load %arg6[%c0_13, %c0_14, %c0_15] : memref<2x18x64xbf16, #tpu.memory_space<vmem>>, vector<2x16x64xbf16>
    %9 = vector.shape_cast %8 : vector<2x16x64xbf16> to vector<32x64xbf16>
    %c0_16 = arith.constant 0 : index
    %c0_17 = arith.constant 0 : index
    %c0_18 = arith.constant 0 : index
    %10 = vector.load %arg2[%c0_16, %c0_17, %c0_18] : memref<3x64x256xbf16, #tpu.memory_space<vmem>>, vector<1x64x256xbf16>
    %11 = vector.shape_cast %10 : vector<1x64x256xbf16> to vector<64x256xbf16>
    %cst_19 = arith.constant dense<0.000000e+00> : vector<32x256xf32>
    %12 = tpu.matmul %9, %11, %cst_19 {dimension_numbers = #tpu.dot_dimension_numbers<[1], [0], [0], [1], [0, 0, 1, 1], [], []>} : vector<32x64xbf16>, vector<64x256xbf16>, vector<32x256xf32> -> vector<32x256xf32>
    %13 = arith.addf %7, %12 : vector<32x256xf32>
    %c0_20 = arith.constant 0 : index
    %c1_21 = arith.constant 1 : index
    %c0_22 = arith.constant 0 : index
    %14 = vector.load %arg6[%c0_20, %c1_21, %c0_22] : memref<2x18x64xbf16, #tpu.memory_space<vmem>>, vector<2x16x64xbf16>
    %15 = vector.shape_cast %14 : vector<2x16x64xbf16> to vector<32x64xbf16>
    %c1_23 = arith.constant 1 : index
    %c0_24 = arith.constant 0 : index
    %c0_25 = arith.constant 0 : index
    %16 = vector.load %arg2[%c1_23, %c0_24, %c0_25] : memref<3x64x256xbf16, #tpu.memory_space<vmem>>, vector<1x64x256xbf16>
    %17 = vector.shape_cast %16 : vector<1x64x256xbf16> to vector<64x256xbf16>
    %cst_26 = arith.constant dense<0.000000e+00> : vector<32x256xf32>
    %18 = tpu.matmul %15, %17, %cst_26 {dimension_numbers = #tpu.dot_dimension_numbers<[1], [0], [0], [1], [0, 0, 1, 1], [], []>} : vector<32x64xbf16>, vector<64x256xbf16>, vector<32x256xf32> -> vector<32x256xf32>
    %19 = arith.addf %13, %18 : vector<32x256xf32>
    %c0_27 = arith.constant 0 : index
    %c2 = arith.constant 2 : index
    %c0_28 = arith.constant 0 : index
    %20 = vector.load %arg6[%c0_27, %c2, %c0_28] : memref<2x18x64xbf16, #tpu.memory_space<vmem>>, vector<2x16x64xbf16>
    %21 = vector.shape_cast %20 : vector<2x16x64xbf16> to vector<32x64xbf16>
    %c2_29 = arith.constant 2 : index
    %c0_30 = arith.constant 0 : index
    %c0_31 = arith.constant 0 : index
    %22 = vector.load %arg2[%c2_29, %c0_30, %c0_31] : memref<3x64x256xbf16, #tpu.memory_space<vmem>>, vector<1x64x256xbf16>
    %23 = vector.shape_cast %22 : vector<1x64x256xbf16> to vector<64x256xbf16>
    %cst_32 = arith.constant dense<0.000000e+00> : vector<32x256xf32>
    %24 = tpu.matmul %21, %23, %cst_32 {dimension_numbers = #tpu.dot_dimension_numbers<[1], [0], [0], [1], [0, 0, 1, 1], [], []>} : vector<32x64xbf16>, vector<64x256xbf16>, vector<32x256xf32> -> vector<32x256xf32>
    %25 = arith.addf %19, %24 : vector<32x256xf32>
    %26 = vector.extract_strided_slice %25 {offsets = [0, 0], sizes = [32, 128], strides = [1, 1]} : vector<32x256xf32> to vector<32x128xf32>
    %27 = vector.extract_strided_slice %0 {offsets = [0, 0], sizes = [1, 128], strides = [1, 1]} : vector<6x128xf32> to vector<1x128xf32>
    %28 = vector.broadcast %27 : vector<1x128xf32> to vector<32x128xf32>
    %29 = arith.mulf %26, %28 : vector<32x128xf32>
    %30 = vector.extract_strided_slice %0 {offsets = [1, 0], sizes = [1, 128], strides = [1, 1]} : vector<6x128xf32> to vector<1x128xf32>
    %31 = vector.broadcast %30 : vector<1x128xf32> to vector<32x128xf32>
    %32 = arith.addf %29, %31 : vector<32x128xf32>
    %cst_33 = arith.constant 0.000000e+00 : f32
    %33 = vector.broadcast %cst_33 : f32 to vector<32x128xf32>
    %34 = arith.maximumf %32, %33 : vector<32x128xf32>
    %cst_34 = arith.constant 0.000000e+00 : bf16
    %35 = vector.broadcast %cst_34 : bf16 to vector<2x1x128xbf16>
    %c0_35 = arith.constant 0 : index
    %c0_36 = arith.constant 0 : index
    %c0_37 = arith.constant 0 : index
    %36 = vector.load %arg7[%c0_35, %c0_36, %c0_37] : memref<2x18x128xbf16, #tpu.memory_space<vmem>>, vector<2x1x128xbf16>
    tpu.vector_store %arg7[%c0_35, %c0_36, %c0_37], %35 {strides = array<i32>} : memref<2x18x128xbf16, #tpu.memory_space<vmem>>, vector<2x1x128xbf16>,
    %cst_38 = arith.constant 0.000000e+00 : bf16
    %37 = vector.broadcast %cst_38 : bf16 to vector<2x1x128xbf16>
    %c0_39 = arith.constant 0 : index
    %c17_40 = arith.constant 17 : index
    %c0_41 = arith.constant 0 : index
    %38 = vector.load %arg7[%c0_39, %c17_40, %c0_41] : memref<2x18x128xbf16, #tpu.memory_space<vmem>>, vector<2x1x128xbf16>
    tpu.vector_store %arg7[%c0_39, %c17_40, %c0_41], %37 {strides = array<i32>} : memref<2x18x128xbf16, #tpu.memory_space<vmem>>, vector<2x1x128xbf16>,
    %39 = vector.shape_cast %34 : vector<32x128xf32> to vector<2x16x128xf32>
    %40 = arith.truncf %39 : vector<2x16x128xf32> to vector<2x16x128xbf16>
    %c0_42 = arith.constant 0 : index
    %c1_43 = arith.constant 1 : index
    %c0_44 = arith.constant 0 : index
    %41 = vector.load %arg7[%c0_42, %c1_43, %c0_44] : memref<2x18x128xbf16, #tpu.memory_space<vmem>>, vector<2x16x128xbf16>
    tpu.vector_store %arg7[%c0_42, %c1_43, %c0_44], %40 {strides = array<i32>} : memref<2x18x128xbf16, #tpu.memory_space<vmem>>, vector<2x16x128xbf16>,
    %cst_45 = arith.constant 0.000000e+00 : f32
    %42 = vector.broadcast %cst_45 : f32 to vector<32x128xf32>
    %c0_46 = arith.constant 0 : index
    %c0_47 = arith.constant 0 : index
    %c0_48 = arith.constant 0 : index
    %43 = vector.load %arg7[%c0_46, %c0_47, %c0_48] : memref<2x18x128xbf16, #tpu.memory_space<vmem>>, vector<2x16x128xbf16>
    %44 = vector.shape_cast %43 : vector<2x16x128xbf16> to vector<32x128xbf16>
    %c0_49 = arith.constant 0 : index
    %c0_50 = arith.constant 0 : index
    %c0_51 = arith.constant 0 : index
    %45 = vector.load %arg3[%c0_49, %c0_50, %c0_51] : memref<3x128x128xbf16, #tpu.memory_space<vmem>>, vector<1x128x128xbf16>
    %46 = vector.shape_cast %45 : vector<1x128x128xbf16> to vector<128x128xbf16>
    %cst_52 = arith.constant dense<0.000000e+00> : vector<32x128xf32>
    %47 = tpu.matmul %44, %46, %cst_52 {dimension_numbers = #tpu.dot_dimension_numbers<[1], [0], [0], [1], [0, 0, 1, 1], [], []>} : vector<32x128xbf16>, vector<128x128xbf16>, vector<32x128xf32> -> vector<32x128xf32>
    %48 = arith.addf %42, %47 : vector<32x128xf32>
    %c0_53 = arith.constant 0 : index
    %c1_54 = arith.constant 1 : index
    %c0_55 = arith.constant 0 : index
    %49 = vector.load %arg7[%c0_53, %c1_54, %c0_55] : memref<2x18x128xbf16, #tpu.memory_space<vmem>>, vector<2x16x128xbf16>
    %50 = vector.shape_cast %49 : vector<2x16x128xbf16> to vector<32x128xbf16>
    %c1_56 = arith.constant 1 : index
    %c0_57 = arith.constant 0 : index
    %c0_58 = arith.constant 0 : index
    %51 = vector.load %arg3[%c1_56, %c0_57, %c0_58] : memref<3x128x128xbf16, #tpu.memory_space<vmem>>, vector<1x128x128xbf16>
    %52 = vector.shape_cast %51 : vector<1x128x128xbf16> to vector<128x128xbf16>
    %cst_59 = arith.constant dense<0.000000e+00> : vector<32x128xf32>
    %53 = tpu.matmul %50, %52, %cst_59 {dimension_numbers = #tpu.dot_dimension_numbers<[1], [0], [0], [1], [0, 0, 1, 1], [], []>} : vector<32x128xbf16>, vector<128x128xbf16>, vector<32x128xf32> -> vector<32x128xf32>
    %54 = arith.addf %48, %53 : vector<32x128xf32>
    %c0_60 = arith.constant 0 : index
    %c2_61 = arith.constant 2 : index
    %c0_62 = arith.constant 0 : index
    %55 = vector.load %arg7[%c0_60, %c2_61, %c0_62] : memref<2x18x128xbf16, #tpu.memory_space<vmem>>, vector<2x16x128xbf16>
    %56 = vector.shape_cast %55 : vector<2x16x128xbf16> to vector<32x128xbf16>
    %c2_63 = arith.constant 2 : index
    %c0_64 = arith.constant 0 : index
    %c0_65 = arith.constant 0 : index
    %57 = vector.load %arg3[%c2_63, %c0_64, %c0_65] : memref<3x128x128xbf16, #tpu.memory_space<vmem>>, vector<1x128x128xbf16>
    %58 = vector.shape_cast %57 : vector<1x128x128xbf16> to vector<128x128xbf16>
    %cst_66 = arith.constant dense<0.000000e+00> : vector<32x128xf32>
    %59 = tpu.matmul %56, %58, %cst_66 {dimension_numbers = #tpu.dot_dimension_numbers<[1], [0], [0], [1], [0, 0, 1, 1], [], []>} : vector<32x128xbf16>, vector<128x128xbf16>, vector<32x128xf32> -> vector<32x128xf32>
    %60 = arith.addf %54, %59 : vector<32x128xf32>
    %61 = vector.extract_strided_slice %0 {offsets = [2, 0], sizes = [1, 128], strides = [1, 1]} : vector<6x128xf32> to vector<1x128xf32>
    %62 = vector.broadcast %61 : vector<1x128xf32> to vector<32x128xf32>
    %63 = arith.mulf %60, %62 : vector<32x128xf32>
    %64 = vector.extract_strided_slice %0 {offsets = [3, 0], sizes = [1, 128], strides = [1, 1]} : vector<6x128xf32> to vector<1x128xf32>
    %65 = vector.broadcast %64 : vector<1x128xf32> to vector<32x128xf32>
    %66 = arith.addf %63, %65 : vector<32x128xf32>
    %cst_67 = arith.constant 0.000000e+00 : f32
    %67 = vector.broadcast %cst_67 : f32 to vector<32x128xf32>
    %68 = arith.maximumf %66, %67 : vector<32x128xf32>
    %69 = vector.extract_strided_slice %25 {offsets = [0, 128], sizes = [32, 128], strides = [1, 1]} : vector<32x256xf32> to vector<32x128xf32>
    %70 = vector.extract_strided_slice %0 {offsets = [4, 0], sizes = [1, 128], strides = [1, 1]} : vector<6x128xf32> to vector<1x128xf32>
    %71 = vector.broadcast %70 : vector<1x128xf32> to vector<32x128xf32>
    %72 = arith.mulf %69, %71 : vector<32x128xf32>
    %73 = vector.extract_strided_slice %0 {offsets = [5, 0], sizes = [1, 128], strides = [1, 1]} : vector<6x128xf32> to vector<1x128xf32>
    %74 = vector.broadcast %73 : vector<1x128xf32> to vector<32x128xf32>
    %75 = arith.addf %72, %74 : vector<32x128xf32>
    %76 = arith.addf %68, %75 : vector<32x128xf32>
    %77 = vector.shape_cast %76 : vector<32x128xf32> to vector<2x16x128xf32>
    %c0_68 = arith.constant 0 : index
    %c0_69 = arith.constant 0 : index
    %c0_70 = arith.constant 0 : index
    %78 = vector.load %arg5[%c0_68, %c0_69, %c0_70] : memref<2x16x128xf32, #tpu.memory_space<vmem>>, vector<2x16x128xf32>
    tpu.vector_store %arg5[%c0_68, %c0_69, %c0_70], %77 {strides = array<i32>} : memref<2x16x128xf32, #tpu.memory_space<vmem>>, vector<2x16x128xf32>,
    return
  }
  func.func @transform_0(%arg0: i32) -> (i32, i32, i32) {
    %c0_i32 = arith.constant 0 : i32
    %c0_i32_0 = arith.constant 0 : i32
    %c0_i32_1 = arith.constant 0 : i32
    return %arg0, %c0_i32, %c0_i32_0 : i32, i32, i32
  }
  func.func @transform_1(%arg0: i32) -> (i32, i32, i32) {
    %c0_i32 = arith.constant 0 : i32
    %c0_i32_0 = arith.constant 0 : i32
    %c0_i32_1 = arith.constant 0 : i32
    %c0_i32_2 = arith.constant 0 : i32
    return %c0_i32, %c0_i32_0, %c0_i32_1 : i32, i32, i32
  }
  func.func @transform_2(%arg0: i32) -> (i32, i32, i32) {
    %c0_i32 = arith.constant 0 : i32
    %c0_i32_0 = arith.constant 0 : i32
    %c0_i32_1 = arith.constant 0 : i32
    %c0_i32_2 = arith.constant 0 : i32
    return %c0_i32, %c0_i32_0, %c0_i32_1 : i32, i32, i32
  }
  func.func @transform_3(%arg0: i32) -> (i32, i32) {
    %c0_i32 = arith.constant 0 : i32
    %c0_i32_0 = arith.constant 0 : i32
    %c0_i32_1 = arith.constant 0 : i32
    return %c0_i32, %c0_i32_0 : i32, i32
  }
  func.func @transform_4(%arg0: i32) -> (i32, i32, i32) {
    %c0_i32 = arith.constant 0 : i32
    %c0_i32_0 = arith.constant 0 : i32
    %c0_i32_1 = arith.constant 0 : i32
    return %arg0, %c0_i32, %c0_i32_0 : i32, i32, i32
  }
}

</mosaic_0001>

<bundles_post_ra>
// kernel: tpu_custom_call.1
= control target key start
LH: loop header
LB: loop body
LE: loop exit
PB: predicated region body
PF: predicated region fallthrough
CT: control target
= control target key end

     0   :  { %9 = vsyncpa [#allocation5], 0  ;;  %s1830_s0 = inlined_call_operand.hbm [shape: bf16[2,16,64], index: 0, kind: input, shape index: {}]   ;;  %s1831_s1 = inlined_call_operand.hbm [shape: bf16[3,64,256], index: 1, kind: input, shape index: {}]   ;;  %s1832_s2 = inlined_call_operand.hbm [shape: bf16[3,128,128], index: 2, kind: input, shape index: {}]   ;;  %s1833_s3 = inlined_call_operand.vmem [shape: f32[6,128], index: 3, kind: input, shape index: {}]   ;;  %s1834_s4 = inlined_call_operand.hbm [shape: f32[2,16,128], index: 4, kind: output, shape index: {}]  }
   0x1   :  { %10 = vsyncpa [#allocation8], 0 }
   0x2   :  { %11 = vsyncpa [#allocation6], 0  ;;  %s1545_s15 = smov [#allocation7]   ;;  %s1451_s19 = scalar_lea.hbm %s1831_s1, 3072 }
   0x3   :  { %s29_s16 = sshll.u32 %s1545_s15, 4  ;;  %p1452_p0 = scmp.ne.s32.totalorder %s1831_s1, %s1451_s19  ;;  %s30_s16 = int_to_ptr.vmem [resolvable:$true] %s29_s16 }
   0x4   :  { %p1455_p1 = scmp.lt.u32.totalorder %s1451_s19, %s1831_s1 }
   0x6   :  { %p1457_p2 = pnand %p1455_p1, %p1452_p0 }
   0x8   :  { %1460 = shalt.err (!%p1457_p2)
}
   0x9   :  { %s1461_s24 = scalar_lea.vmem %s30_s16, 3072  ;;  %p1466_p4 = scmp.lt.s32.totalorder %s30_s16, %s30_s16 }
   0xa   :  { %p1462_p3 = scmp.ne.s32.totalorder %s30_s16, %s1461_s24  ;;  %p1467_p5 = scmp.lt.s32.totalorder %s1461_s24, %s1461_s24 }
   0xc   :  { %p1468_p6 = por %p1467_p5, %p1466_p4 }
   0xe   :  { %p1469_p7 = pnand %p1468_p6, %p1462_p3 }
  0x10   :  { %1472 = shalt.err (!%p1469_p7)
}
  0x11   :  { %s1546_s25 = smov 128   ;;  %s1547_s26 = smov 8  }
  0x12   :  { %35 = dma.hbm_to_vmem [thread:$0]  %s1831_s1, 3072, %s30_s16, [#allocation8], %s1546_s25, %s1546_s25, %s1547_s26  }
  0x13   :  { %s1548_s29 = smov [#allocation4]   ;;  %s1473_s7 = scalar_lea.hbm %s1830_s0, 256 }
  0x14   :  { %s17_s30 = sshll.u32 %s1548_s29, 4  ;;  %p1474_p8 = scmp.ne.s32.totalorder %s1830_s0, %s1473_s7  ;;  %s18_s30 = int_to_ptr.vmem [resolvable:$true] %s17_s30 }
  0x15   :  { %p1477_p9 = scmp.lt.u32.totalorder %s1473_s7, %s1830_s0 }
  0x17   :  { %p1479_p10 = pnand %p1477_p9, %p1474_p8 }
  0x19   :  { %1482 = shalt.err (!%p1479_p10)
}
  0x1a   :  { %s1483_s12 = scalar_lea.vmem %s18_s30, 256  ;;  %p1488_p12 = scmp.lt.s32.totalorder %s18_s30, %s18_s30 }
  0x1b   :  { %p1484_p11 = scmp.ne.s32.totalorder %s18_s30, %s1483_s12  ;;  %p1489_p13 = scmp.lt.s32.totalorder %s1483_s12, %s1483_s12 }
  0x1d   :  { %p1490_p0 = por %p1489_p13, %p1488_p12 }
  0x1f   :  { %p1491_p1 = pnand %p1490_p0, %p1484_p11 }
  0x21   :  { %1494 = shalt.err (!%p1491_p1)
}
  0x22   :  { %s1549_s1 = smov 64   ;;  %s1550_s13 = smov 4  }
  0x23   :  { %23 = dma.hbm_to_vmem [thread:$0]  %s1830_s0, 256, %s18_s30, [#allocation5], %s1549_s1, %s1549_s1, %s1550_s13  }
  0x24   :  { %s1551_s16 = smov [#allocation9]   ;;  %s1495_s20 = scalar_lea.hbm %s1832_s2, 3072 }
  0x25   :  { %s41_s17 = sshll.u32 %s1551_s16, 4  ;;  %p1496_p2 = scmp.ne.s32.totalorder %s1832_s2, %s1495_s20  ;;  %s42_s17 = int_to_ptr.vmem [resolvable:$true] %s41_s17 }
  0x26   :  { %p1499_p3 = scmp.lt.u32.totalorder %s1495_s20, %s1832_s2 }
  0x28   :  { %p1501_p4 = pnand %p1499_p3, %p1496_p2 }
  0x2a   :  { %1504 = shalt.err (!%p1501_p4)
}
  0x2b   :  { %s1505_s27 = scalar_lea.vmem %s42_s17, 3072  ;;  %p1510_p6 = scmp.lt.s32.totalorder %s42_s17, %s42_s17 }
  0x2c   :  { %p1506_p5 = scmp.ne.s32.totalorder %s42_s17, %s1505_s27  ;;  %p1511_p7 = scmp.lt.s32.totalorder %s1505_s27, %s1505_s27 }
  0x2e   :  { %p1512_p8 = por %p1511_p7, %p1510_p6 }
  0x30   :  { %p1513_p9 = pnand %p1512_p8, %p1506_p5 }
  0x32   :  { %1516 = shalt.err (!%p1513_p9)
}
  0x33   :  { %47 = dma.hbm_to_vmem [thread:$0]  %s1832_s2, 3072, %s42_s17, [#allocation8], %s1549_s1, %s1549_s1, %s1550_s13  }
  0x34   :  { %1539 = dma.done.wait [#allocation5], 256  }
  0x35   :  { %1540 = vsyncadd [#allocation5], 4294967040 }
  0x36   :  { %1541 = dma.done.wait [#allocation8], 6144  }
  0x37   :  { %1542 = vsyncadd [#allocation8], 4294961152  ;;  %v1552_v0 = vmov 0   ;;  %vm61_vm0 = vcmask 516096   ;;  %v1388_v1 = vld [vmem:[#allocation7 + $0x44] ss:$8 sps:$4 sm:$0xff]  }
  0x38   :  { %300 = vmatprep.mubr.bf16.mxu0 %v1552_v0  ;;  %vm62_vm1 = vsmask.f32 256  ;;  %v1390_v2 = vld [vmem:[#allocation7 + $0x40] ss:$8 sps:$4 sm:$0xff]   ;;  %268 = vmatprep.subr.bf16.mxu0 %v1388_v1  ;;  %v1391_v3 = vld [vmem:[#allocation7 + $0x54] ss:$8 sps:$4 sm:$0xff]  }
  0x39   :  { %vm70_vm2 = vsmask.f32 7938  ;;  %269 = vmatpush1.bf16.msra.mxu0 %v1390_v2  ;;  %v1393_v4 = vld [vmem:[#allocation7 + $0x50] ss:$8 sps:$4 sm:$0xff]   ;;  %vm1620_vm3 = vmand %vm61_vm0, %vm62_vm1  ;;  %v1394_v6 = vld [vmem:[#allocation7 + $0x64] ss:$8 sps:$4 sm:$0xff]  }
  0x3a   :  { %270 = vmatprep.subr.bf16.mxu0 %v1391_v3  ;;  %vm1625_vm4 = vmand %vm61_vm0, %vm70_vm2  ;;  %vm82_vm5 = vsmask.f32 4368  ;;  %v1396_v8 = vld [vmem:[#allocation7 + $0x60] ss:$8 sps:$4 sm:$0xff]   ;;  %v1397_v9 = vld [vmem:[#allocation7 + $0x74] ss:$8 sps:$4 sm:$0xff]  }
  0x3b   :  { %v64_v10 = vld [vmem:[#allocation2] sm:$0x1]  ;;  %v67_v12 = vld [vmem:[#allocation2 + $0xc] sm:$0x1]  ;;  %v72_v13 = vld [vmem:[#allocation2 + $0x8] sm:$0x1] }
  0x3c   :  { %v65_v11 = vsel %vm1620_vm3, 0, %v64_v10  ;;  %v68_v14 = vsel %vm1620_vm3, 0, %v67_v12  ;;  %v73_v15 = vsel %vm1625_vm4, 0, %v72_v13  ;;  %v78_v16 = vld [vmem:[#allocation4] sm:$0xf]  ;;  %vm124_vm6 = vcmask 519168   ;;  %vm1637_vm7 = vmor %vm62_vm1, %vm82_vm5 }
  0x3d   :  { %271 = vmatpush1.bf16.msra.mxu0 %v1393_v4  ;;  %66 = vst [vmem:[#allocation2] sm:$0x1] %v65_v11  ;;  %v79_v17 = vld [vmem:[#allocation4 + $0x4] sm:$0xf]  ;;  %69 = vst [vmem:[#allocation2 + $0xc] sm:$0x1] %v68_v14 }
  0x3e   :  { %272 = vmatprep.subr.bf16.mxu0 %v1394_v6  ;;  %74 = vst [vmem:[#allocation2 + $0x8] sm:$0x1] %v73_v15  ;;  %v80_v18 = vld [vmem:[#allocation4 + $0x8] sm:$0xf]  ;;  %v85_v19 = vshrl.u32 %v78_v16, 16  ;;  %v88_v20 = vshll.u32 %v78_v16, 16  ;;  %vm1643_vm8 = vmand %vm124_vm6, %vm70_vm2 }
  0x3f   :  { %v93_v21 = vshrl.u32 %v79_v17, 16  ;;  %v96_v22 = vshll.u32 %v79_v17, 16  ;;  %v102_v23 = vshrl.u32 %v80_v18, 16  ;;  %v105_v24 = vshll.u32 %v80_v18, 16  ;;  %v1399_v25 = vld [vmem:[#allocation7 + $0x70] ss:$8 sps:$4 sm:$0xff]  }
  0x40   :  { %v87_v26 = vrot.slane %v85_v19, 7  ;;  %v1402_v28 = vld [vmem:[#allocation7 + $0x4] ss:$8 sps:$4 sm:$0xff]   ;;  %v75_v36 = vld [vmem:[#allocation2 + $0x14] sm:$0x1]  ;;  %vm261_vm12 = vcmask 523264  }
  0x41   :  { %273 = vmatpush1.bf16.msra.mxu0 %v1396_v8  ;;  %v95_v27 = vrot.slane %v93_v21, 7  ;;  %v104_v30 = vrot.slane %v102_v23, 7  ;;  %v81_v37 = vld [vmem:[#allocation4 + $0xc] sm:$0xf]  ;;  %v76_v39 = vsel %vm1625_vm4, 0, %v75_v36  ;;  %vm436_vm13 = vcmask 1042432  }
  0x42   :  { %274 = vmatprep.subr.bf16.mxu0 %v1397_v9  ;;  %v90_v31 = vor.u32 %v88_v20, %v87_v26  ;;  %v91_v32 = vrot.slane %v87_v26, 4  ;;  %v110_v40 = vshrl.u32 %v81_v37, 16  ;;  %77 = vst [vmem:[#allocation2 + $0x14] sm:$0x1] %v76_v39  ;;  %v113_v44 = vshll.u32 %v81_v37, 16 }
  0x43   :  { %v98_v33 = vor.u32 %v96_v22, %v95_v27  ;;  %v100_v34 = vrot.slane %v95_v27, 4  ;;  %v107_v38 = vor.u32 %v105_v24, %v104_v30  ;;  %v108_v43 = vrot.slane %v104_v30, 4  ;;  %v1400_v18 = vld [vmem:[#allocation7] ss:$8 sps:$4 sm:$0xff]   ;;  %v1405_v27 = vld [vmem:[#allocation7 + $0x14] ss:$8 sps:$4 sm:$0xff]  }
  0x44   :  { %v126_v42 = vld [vmem:[#allocation2] sm:$0xf]  ;;  %v134_v47 = vld [vmem:[#allocation2 + $0xc] sm:$0xf]  ;;  %v112_v48 = vrot.slane %v110_v40, 7  ;;  %vm437_vm14 = vcmask 1046532  }
  0x45   :  { %275 = vmatpush1.bf16.msra.mxu0 %v1399_v25  ;;  %v99_v41 = vsel %vm1637_vm7, %v91_v32, %v98_v33  ;;  %v127_v45 = vsel %vm1643_vm8, %v90_v31, %v126_v42  ;;  %v131_v46 = vld [vmem:[#allocation2 + $0x8] sm:$0x1]  ;;  %v135_v50 = vsel %vm1643_vm8, %v107_v38, %v134_v47  ;;  %vm155_vm9 = vsmask.f32 3328  ;;  %v1403_v33 = vld [vmem:[#allocation7 + $0x10] ss:$8 sps:$4 sm:$0xff]   ;;  %vm1710_vm15 = vmor %vm436_vm13, %vm437_vm14 }
  0x46   :  { %377 = vmatprep.subr.bf16.mxu0 %v1402_v28  ;;  %130 = vst.msk [vmem:[#allocation2 + $0x4] sm:$0xf] %vm124_vm6, %v99_v41  ;;  %128 = vst [vmem:[#allocation2] sm:$0xf] %v127_v45  ;;  %v132_v49 = vsel %vm1620_vm3, %v100_v34, %v131_v46  ;;  %v115_v51 = vor.u32 %v113_v44, %v112_v48  ;;  %v117_v52 = vrot.slane %v112_v48, 4  ;;  %vm595_vm0 = vcmask 1040384  }
  0x47   :  { %133 = vst [vmem:[#allocation2 + $0x8] sm:$0x1] %v132_v49  ;;  %136 = vst [vmem:[#allocation2 + $0xc] sm:$0xf] %v135_v50  ;;  %vm156_vm10 = vsmask.f32 7440 }
  0x48   :  { %v116_v53 = vsel %vm1637_vm7, %v108_v43, %v115_v51  ;;  %vm1681_vm11 = vmor %vm155_vm9, %vm156_vm10  ;;  %v1408_v34 = vld [vmem:[#allocation7 + $0x24] ss:$8 sps:$4 sm:$0xff]   ;;  %v1406_v38 = vld [vmem:[#allocation7 + $0x20] ss:$8 sps:$4 sm:$0xff]  }
  0x49   :  { %137 = vst.msk [vmem:[#allocation2 + $0x10] sm:$0xf] %vm124_vm6, %v116_v53  ;;  %v138_v54 = vld [vmem:[#allocation2 + $0x14] sm:$0x1]  ;;  %v1409_v41 = vld [vmem:[#allocation7 + $0x30] ss:$8 sps:$4 sm:$0xff]   ;;  %vm1737_vm4 = vmand %vm595_vm0, %vm70_vm2 }
  0x4a   :  { %v139_v56 = vsel %vm1620_vm3, %v117_v52, %v138_v54  ;;  %v1411_v40 = vld [vmem:[#allocation7 + $0x34] ss:$8 sps:$4 sm:$0xff]   ;;  %v1414_v42 = vld [vmem:[#allocation7 + $0x84] ss:$8 sps:$4 sm:$0xff]   ;;  %v1412_v44 = vld [vmem:[#allocation7 + $0x80] ss:$8 sps:$4 sm:$0xff]  }
  0x4b   :  { %140 = vst [vmem:[#allocation2 + $0x14] sm:$0x1] %v139_v56  ;;  %v1417_v45 = vld [vmem:[#allocation7 + $0x94] ss:$8 sps:$4 sm:$0xff]   ;;  %v1415_v47 = vld [vmem:[#allocation7 + $0x90] ss:$8 sps:$4 sm:$0xff]   ;;  %vm1730_vm3 = vmand %vm595_vm0, %vm62_vm1 }
  0x4c   :  { %v1420_v48 = vld [vmem:[#allocation7 + $0xa4] ss:$8 sps:$4 sm:$0xff]   ;;  %v1418_v52 = vld [vmem:[#allocation7 + $0xa0] ss:$8 sps:$4 sm:$0xff]   ;;  %vm662_vm1 = vcmask 1043456  }
  0x4d   :  { %v1661_v55 = vld [vmem:[#allocation2 + $0x4] sm:$0xf]  ;;  %v1665_v57 = vld [vmem:[#allocation2] sm:$0xf]  ;;  %vm1770_vm5 = vmand %vm662_vm1, %vm70_vm2 }
  0x4e   :  { %v168_v58 = vshll.u32 %v1661_v55, 16  ;;  %v172_v59 = vshrl.u32 %v1661_v55, 16  ;;  %v1669_v60 = vld [vmem:[#allocation2 + $0x8] sm:$0x1]  ;;  %v159_v61 = vshrl.u32 %v1665_v57, 16  ;;  %v162_v62 = vshll.u32 %v1665_v57, 16 }
  0x4f   :  { %v1673_v63 = vld [vmem:[#allocation2 + $0xc] sm:$0xf]  ;;  %v178_v3 = vshll.u32 %v1669_v60, 16  ;;  %v1199_v43 = vcombine.low %v1665_v57, %v1661_v55  ;;  %v441_v46 = vrot.slane %v1661_v55, 5  ;;  %v430_v49 = vld [vmem:[#allocation2] sm:$0xe] }
  0x50   :  { %v170_v1 = vrot.slane %v168_v58, 5  ;;  %v174_v2 = vrot.slane %v172_v59, 4  ;;  %v161_v4 = vrot.slane %v159_v61, 4  ;;  %v164_v5 = vrot.slane %v162_v62, 5  ;;  %v1678_v10 = vld [vmem:[#allocation2 + $0x10] sm:$0xf] }
  0x51   :  { %v183_v6 = vshrl.u32 %v1673_v63, 16  ;;  %v186_v7 = vshll.u32 %v1673_v63, 16  ;;  %v180_v9 = vrot.slane %v178_v3, 5  ;;  %v192_v15 = vshll.u32 %v1678_v10, 16  ;;  %v1424_v55 = vld [vmem:[#allocation7 + $0xb4] ss:$8 sps:$4 sm:$0xff]  }
  0x52   :  { %v175_v8 = vor.u32 %v174_v2, %v170_v1  ;;  %v165_v12 = vor.u32 %v164_v5, %v161_v4  ;;  %v196_v17 = vshrl.u32 %v1678_v10, 16  ;;  %v1687_v20 = vld [vmem:[#allocation2 + $0x14] sm:$0x1]  ;;  %v1200_v50 = vcombine.low %v1673_v63, %v1678_v10  ;;  %v1422_v57 = vld [vmem:[#allocation7 + $0xb0] ss:$8 sps:$4 sm:$0xff]  }
  0x53   :  { %v185_v13 = vrot.slane %v183_v6, 4  ;;  %v188_v14 = vrot.slane %v186_v7, 5  ;;  %v194_v22 = vrot.slane %v192_v15, 5  ;;  %v202_v25 = vshll.u32 %v1687_v20, 16  ;;  %v431_v61 = vld [vmem:[#allocation2 + $0xc] sm:$0xe] }
  0x54   :  { %v176_v16 = vrot.slane %v175_v8, 4  ;;  %v166_v19 = vrot.slane %v165_v12, 4  ;;  %v198_v24 = vrot.slane %v196_v17, 4  ;;  %v444_v51 = vrot.slane %v1669_v60, 5  ;;  %v1425_v6 = vld [vmem:[#allocation9] sm:$0xff]  }
  0x55   :  { %v189_v21 = vor.u32 %v188_v14, %v185_v13  ;;  %v204_v32 = vrot.slane %v202_v25, 5  ;;  %v1211_v53 = vrot.slane %v430_v49, 9  ;;  %v443_v54 = vrot.slane %v441_v46, 4  ;;  %1315 = vmatprep.subr.bf16.mxu1 %v1425_v6  ;;  %v597_v8 = vld [vmem:[#allocation3] sm:$0x1]  ;;  %v1427_v14 = vld [vmem:[#allocation9 + $0x10] sm:$0xff]  }
  0x56   :  { %v181_v23 = vsel %vm1681_vm11, %v176_v16, %v180_v9  ;;  %v171_v26 = vsel %vm1681_vm11, %v166_v19, %v170_v1  ;;  %v199_v31 = vor.u32 %v198_v24, %v194_v22  ;;  %v448_v60 = vrot.slane %v1678_v10, 5  ;;  %1316 = vmatpush3.bf16.msra.mxu1 %v1425_v6  ;;  %v604_v12 = vld [vmem:[#allocation3 + $0x8] sm:$0x1]  ;;  %v600_v16 = vld [vmem:[#allocation3 + $0xc] sm:$0x1]  ;;  %v1433_v24 = vld [vmem:[#allocation9 + $0x28] sm:$0xff]  }
  0x57   :  { %v190_v28 = vrot.slane %v189_v21, 4  ;;  %v1187_v30 = vcombine.low %v171_v26, %v181_v23  ;;  %v442_v58 = vsel %vm1710_vm15, %v1211_v53, %v441_v46  ;;  %v445_v59 = vsel %vm1710_vm15, %v443_v54, %v444_v51  ;;  %v1428_v15 = vld [vmem:[#allocation9 + $0x40] sm:$0xff]   ;;  %v607_v19 = vld [vmem:[#allocation3 + $0x14] sm:$0x1]  ;;  %v1432_v23 = vld [vmem:[#allocation9 + $0x50] sm:$0xff]  }
  0x58   :  { %v200_v35 = vrot.slane %v199_v31, 4  ;;  %v1213_v62 = vcombine.low %v442_v58, %v445_v59  ;;  %v1212_v63 = vrot.slane %v431_v61, 9  ;;  %v450_v1 = vrot.slane %v448_v60, 4  ;;  %v1434_v25 = vld [vmem:[#allocation9 + $0x58] sm:$0xff]   ;;  %v1435_v26 = vld [vmem:[#allocation9 + $0x30] sm:$0xff]   ;;  %v1747_v31 = vld [vmem:[#allocation9 + $0x80] sm:$0xff]  }
  0x59   :  { %1197 = vmatmul.mubr.msk.bf16.vlgmr.msra.gmra.mrb[0].mxu0 %vm261_vm12, %v1187_v30  ;;  %v195_v36 = vsel %vm1681_vm11, %v190_v28, %v194_v22  ;;  %v451_v2 = vrot.slane %v1687_v20, 5  ;;  %v598_v9 = vsel %vm1730_vm3, 0, %v597_v8  ;;  %v605_v13 = vsel %vm1737_vm4, 0, %v604_v12  ;;  %v1430_v20 = vld [vmem:[#allocation9 + $0x48] sm:$0xff]   ;;  %v1431_v22 = vld [vmem:[#allocation9 + $0x20] sm:$0xff]   ;;  %v1438_v28 = vld [vmem:[#allocation9 + $0x38] sm:$0xff]  }
  0x5a   :  { %378 = vmatpush1.bf16.msra.mxu0 %v1400_v18  ;;  %310 = vmatprep.mubr.bf16.mxu0 %v1552_v0  ;;  %v205_v37 = vsel %vm1681_vm11, %v200_v35, %v204_v32  ;;  %v449_v3 = vsel %vm1710_vm15, %v1212_v63, %v448_v60  ;;  %599 = vst [vmem:[#allocation3] sm:$0x1] %v598_v9  ;;  %606 = vst [vmem:[#allocation3 + $0x8] sm:$0x1] %v605_v13  ;;  %v601_v17 = vsel %vm1730_vm3, 0, %v600_v16  ;;  %v1429_v18 = vld [vmem:[#allocation9 + $0x18] sm:$0xff]  }
  0x5b   :  { %379 = vmatprep.subr.bf16.mxu0 %v1405_v27  ;;  %v1188_v39 = vcombine.low %v195_v36, %v205_v37  ;;  %v452_v4 = vsel %vm1710_vm15, %v450_v1, %v451_v2  ;;  %602 = vst [vmem:[#allocation3 + $0xc] sm:$0x1] %v601_v17  ;;  %v608_v21 = vsel %vm1737_vm4, 0, %v607_v19  ;;  %v1437_v27 = vld [vmem:[#allocation9 + $0x60] sm:$0xff]   ;;  %v1439_v30 = vld [vmem:[#allocation9 + $0x68] sm:$0xff]   ;;  %v1442_v32 = vld [vmem:[#allocation9 + $0x70] sm:$0xff]  }
  0x5c   :  { %v1214_v5 = vcombine.low %v449_v3, %v452_v4  ;;  %609 = vst [vmem:[#allocation3 + $0x14] sm:$0x1] %v608_v21  ;;  %v1756_v37 = vld [vmem:[%s1833_s3] sm:$0x3f]  ;;  %s1553_s3 = smov [#allocation10]  }
  0x5d   :  { %s1174_s30 = sshll.u32 %s1553_s3, 4  ;;  %s1175_s30 = int_to_ptr.vmem [resolvable:$true] %s1174_s30 }
  0x5e   :  { %380 = vmatpush1.bf16.msra.mxu0 %v1403_v33  ;;  %v1444_v33 = vld [vmem:[#allocation9 + $0x78] sm:$0xff]   ;;  %s1517_s5 = scalar_lea.vmem %s1175_s30, 512  ;;  %p1522_p11 = scmp.lt.s32.totalorder %s1175_s30, %s1175_s30 }
  0x5f   :  { %381 = vmatprep.subr.bf16.mxu0 %v1408_v34  ;;  %v575_v34 = vlaneseq  ;;  %p1518_p10 = scmp.ne.s32.totalorder %s1175_s30, %s1517_s5  ;;  %p1523_p12 = scmp.lt.s32.totalorder %s1517_s5, %s1517_s5 }
  0x61   :  { %1198 = vmatmul.mubr.msk.bf16.gmra.mrb[4].mxu0 %vm261_vm12, %v1188_v39  ;;  %v1750_v35 = vshrl.u32 %v575_v34, 7  ;;  %v664_v2 = vld [vmem:[#allocation3] sm:$0xf]  ;;  %v668_v9 = vld [vmem:[#allocation3 + $0x8] sm:$0x1]  ;;  %p1524_p13 = por %p1523_p12, %p1522_p11 }
  0x62   :  { %382 = vmatpush1.bf16.msra.mxu0 %v1406_v38  ;;  %409 = vmatprep.mubr.bf16.mxu0 %v1552_v0 }
  0x63   :  { %383 = vmatprep.subr.bf16.mxu0 %v1411_v40  ;;  %v577_v36 = vsub.s32 0, %v1750_v35  ;;  %v585_v38 = vsub.s32 1, %v1750_v35  ;;  %p1525_p0 = pnand %p1524_p13, %p1518_p10 }
  0x65   :  { %v578_v39 = vrot.slane %v1756_v37, %v577_v36  ;;  %v586_v40 = vrot.slane %v1756_v37, %v585_v38 }
  0x66   :  { %384 = vmatpush1.bf16.msra.mxu0 %v1409_v41 }
  0x67   :  { %514 = vmatprep.subr.bf16.mxu0 %v1414_v42 }
  0x69   :  { %1209 = vmatmul.mubr.msk.bf16.vlgmr.msra.gmra.mrb[0].mxu0 %vm261_vm12, %v1199_v43 }
  0x6a   :  { %515 = vmatpush1.bf16.msra.mxu0 %v1412_v44  ;;  %419 = vmatprep.mubr.bf16.mxu0 %v1552_v0 }
  0x6b   :  { %516 = vmatprep.subr.bf16.mxu0 %v1417_v45 }
  0x6e   :  { %517 = vmatpush1.bf16.msra.mxu0 %v1415_v47 }
  0x6f   :  { %518 = vmatprep.subr.bf16.mxu0 %v1420_v48 }
  0x71   :  { %1210 = vmatmul.mubr.msk.bf16.gmra.mrb[4].mxu0 %vm261_vm12, %v1200_v50 }
  0x72   :  { %519 = vmatpush1.bf16.msra.mxu0 %v1418_v52  ;;  %546 = vmatprep.mubr.bf16.mxu0 %v1552_v0 }
  0x73   :  { %520 = vmatprep.subr.bf16.mxu0 %v1424_v55 }
  0x76   :  { %521 = vmatpush1.bf16.msra.mxu0 %v1422_v57 }
  0x77   :  { %1295 = vmatprep.subr.bf16.mxu0 %v1428_v15 }
  0x79   :  { %1223 = vmatmul.mubr.msk.bf16.vlgmr.msra.gmra.mrb[0].mxu0 %vm261_vm12, %v1213_v62 }
  0x7a   :  { %556 = vmatprep.mubr.bf16.mxu0 %v1552_v0  ;;  %v1426_v0 = vld [vmem:[#allocation9 + $0x8] sm:$0xff]   ;;  %1296 = vmatpush3.bf16.msra.mxu0 %v1428_v15 }
  0x7b   :  { %1317 = vmatprep.subr.bf16.mxu1 %v1426_v0  ;;  %1297 = vmatprep.subr.bf16.mxu0 %v1430_v20 }
  0x7c   :  { %1318 = vmatpush3.bf16.msra.mxu1 %v1426_v0 }
  0x7d   :  { %1319 = vmatprep.subr.bf16.mxu1 %v1427_v14 }
  0x7e   :  { %1298 = vmatpush3.bf16.msra.mxu0 %v1430_v20 }
  0x7f   :  { %1299 = vmatprep.subr.bf16.mxu0 %v1432_v23 }
  0x80   :  { %1320 = vmatpush3.bf16.msra.mxu1 %v1427_v14 }
  0x81   :  { %1224 = vmatmul.mubr.msk.bf16.gmra.mrb[4].mxu0 %vm261_vm12, %v1214_v5  ;;  %1321 = vmatprep.subr.bf16.mxu1 %v1429_v18 }
  0x82   :  { %1300 = vmatpush3.bf16.msra.mxu0 %v1432_v23  ;;  %v671_v23 = vld [vmem:[#allocation3 + $0xc] sm:$0xf] }
  0x83   :  { %1301 = vmatprep.subr.bf16.mxu0 %v1434_v25 }
  0x84   :  { %1322 = vmatpush3.bf16.msra.mxu1 %v1429_v18 }
  0x85   :  { %1323 = vmatprep.subr.bf16.mxu1 %v1431_v22 }
  0x86   :  { %1302 = vmatpush3.bf16.msra.mxu0 %v1434_v25 }
  0x87   :  { %1303 = vmatprep.subr.bf16.mxu0 %v1437_v27 }
  0x88   :  { %1324 = vmatpush3.bf16.msra.mxu1 %v1431_v22 }
  0x89   :  { %1325 = vmatprep.subr.bf16.mxu1 %v1433_v24 }
  0x8a   :  { %1304 = vmatpush3.bf16.msra.mxu0 %v1437_v27 }
  0x8b   :  { %1305 = vmatprep.subr.bf16.mxu0 %v1439_v30 }
  0x8c   :  { %1326 = vmatpush3.bf16.msra.mxu1 %v1433_v24 }
  0x8d   :  { %1327 = vmatprep.subr.bf16.mxu1 %v1435_v26 }
  0x8e   :  { %1306 = vmatpush3.bf16.msra.mxu0 %v1439_v30 }
  0x8f   :  { %1307 = vmatprep.subr.bf16.mxu0 %v1442_v32 }
  0x90   :  { %1328 = vmatpush3.bf16.msra.mxu1 %v1435_v26 }
  0x91   :  { %1329 = vmatprep.subr.bf16.mxu1 %v1438_v28 }
  0x92   :  { %1308 = vmatpush3.bf16.msra.mxu0 %v1442_v32  ;;  %v675_v32 = vld [vmem:[#allocation3 + $0x14] sm:$0x1] }
  0x93   :  { %1309 = vmatprep.subr.bf16.mxu0 %v1444_v33 }
  0x94   :  { %1330 = vmatpush3.bf16.msra.mxu1 %v1438_v28 }
  0x95   :  { %1335 = vmatprep.subr.bf16.mxu1 %v1747_v31 }
  0x96   :  { %1310 = vmatpush3.bf16.msra.mxu0 %v1444_v33 }
 0x14c   :  { %v548_v41 = vpop.f32.mrb[0].mxu0 }
 0x14d   :  { %v579_v42 = vmul.f32 %v578_v39, %v548_v41  ;;  %v1761_v43 = vpop.f32.mrb[1].mxu0 }
 0x14e   :  { %v552_v44 = vpop.f32.mrb[2].mxu0 }
 0x14f   :  { %v587_v45 = vadd.f32 %v586_v40, %v579_v42  ;;  %v580_v46 = vmul.f32 %v578_v39, %v552_v44  ;;  %v1763_v47 = vpop.f32.mrb[3].mxu0 }
 0x151   :  { %v591_v48 = vmax.f32 %v587_v45, 0.0  ;;  %v588_v49 = vadd.f32 %v586_v40, %v580_v46 }
 0x153   :  { %v1261_v50 = vpack.c.bf16 %v591_v48, %v591_v48  ;;  %v592_v51 = vmax.f32 %v588_v49, 0.0 }
 0x154   :  { %v558_v52 = vpop.f32.mrb[4].mxu0 }
 0x155   :  { %v623_v53 = vshrl.u32 %v1261_v50, 16  ;;  %v1262_v54 = vpack.c.bf16 %v592_v51, %v592_v51  ;;  %v581_v55 = vmul.f32 %v578_v39, %v558_v52  ;;  %v1765_v57 = vpop.f32.mrb[5].mxu0  ;;  %v626_v60 = vshll.u32 %v1261_v50, 16 }
 0x156   :  { %v562_v58 = vpop.f32.mrb[6].mxu0 }
 0x157   :  { %v625_v59 = vrot.slane %v623_v53, 7  ;;  %v631_v61 = vshrl.u32 %v1262_v54, 16  ;;  %v589_v62 = vadd.f32 %v586_v40, %v581_v55  ;;  %v1767_v63 = vpop.f32.mrb[7].mxu0  ;;  %v582_v3 = vmul.f32 %v578_v39, %v562_v58 }
 0x158   :  { %v634_v6 = vshll.u32 %v1262_v54, 16 }
 0x159   :  { %v628_v4 = vor.u32 %v626_v60, %v625_v59  ;;  %v633_v5 = vrot.slane %v631_v61, 7  ;;  %v593_v8 = vmax.f32 %v589_v62, 0.0  ;;  %v629_v0 = vrot.slane %v625_v59, 4 }
 0x15a   :  { %v590_v10 = vadd.f32 %v586_v40, %v582_v3 }
 0x15b   :  { %v665_v12 = vsel %vm1770_vm5, %v628_v4, %v664_v2  ;;  %v636_v13 = vor.u32 %v634_v6, %v633_v5  ;;  %v638_v14 = vrot.slane %v633_v5, 4  ;;  %v1263_v15 = vpack.c.bf16 %v593_v8, %v593_v8 }
 0x15c   :  { %666 = vst [vmem:[#allocation3] sm:$0xf] %v665_v12  ;;  %v594_v16 = vmax.f32 %v590_v10, 0.0 }
 0x15d   :  { %v637_v17 = vsel %vm1637_vm7, %v629_v0, %v636_v13  ;;  %v669_v18 = vsel %vm1730_vm3, %v638_v14, %v668_v9  ;;  %v640_v19 = vshrl.u32 %v1263_v15, 16  ;;  %v643_v22 = vshll.u32 %v1263_v15, 16  ;;  %v1443_v15 = vld [vmem:[#allocation9 + $0x88] sm:$0xff]  }
 0x15e   :  { %667 = vst [vmem:[#allocation3 + $0x4] sm:$0xf] %v637_v17  ;;  %670 = vst [vmem:[#allocation3 + $0x8] sm:$0x1] %v669_v18  ;;  %v1264_v20 = vpack.c.bf16 %v594_v16, %v594_v16 }
 0x15f   :  { %v642_v21 = vrot.slane %v640_v19, 7 }
 0x160   :  { %v648_v24 = vshrl.u32 %v1264_v20, 16  ;;  %v651_v27 = vshll.u32 %v1264_v20, 16 }
 0x161   :  { %v645_v25 = vor.u32 %v643_v22, %v642_v21  ;;  %v646_v28 = vrot.slane %v642_v21, 4 }
 0x162   :  { %v650_v26 = vrot.slane %v648_v24, 7 }
 0x163   :  { %v672_v30 = vsel %vm1770_vm5, %v645_v25, %v671_v23  ;;  %v678_v33 = vld [vmem:[#allocation3] sm:$0xf] }
 0x164   :  { %673 = vst [vmem:[#allocation3 + $0xc] sm:$0xf] %v672_v30  ;;  %v653_v34 = vor.u32 %v651_v27, %v650_v26  ;;  %v655_v36 = vrot.slane %v650_v26, 4  ;;  %v701_v38 = vshrl.u32 %v678_v33, 16  ;;  %v704_v39 = vshll.u32 %v678_v33, 16  ;;  %v1445_v26 = vld [vmem:[#allocation9 + $0x90] sm:$0xff]  }
 0x165   :  { %v679_v40 = vld [vmem:[#allocation3 + $0x4] sm:$0xf]  ;;  %v698_v46 = vld [vmem:[#allocation3 + $0x8] sm:$0x1]  ;;  %v979_v29 = vld [vmem:[#allocation3] sm:$0xe] }
 0x166   :  { %v654_v41 = vsel %vm1637_vm7, %v646_v28, %v653_v34  ;;  %v676_v42 = vsel %vm1730_vm3, %v655_v36, %v675_v32  ;;  %v703_v44 = vrot.slane %v701_v38, 4  ;;  %v706_v45 = vrot.slane %v704_v39, 5  ;;  %v1448_v36 = vld [vmem:[#allocation9 + $0xa8] sm:$0xff]   ;;  %v1449_v38 = vld [vmem:[#allocation9 + $0xb0] sm:$0xff]  }
 0x167   :  { %674 = vst [vmem:[#allocation3 + $0x10] sm:$0xf] %v654_v41  ;;  %677 = vst [vmem:[#allocation3 + $0x14] sm:$0x1] %v676_v42  ;;  %v710_v48 = vshll.u32 %v679_v40, 16  ;;  %v714_v49 = vshrl.u32 %v679_v40, 16  ;;  %v1239_v50 = vcombine.low %v678_v33, %v679_v40 }
 0x168   :  { %v987_v51 = vrot.slane %v679_v40, 5  ;;  %v707_v52 = vor.u32 %v706_v45, %v703_v44  ;;  %v720_v55 = vshll.u32 %v698_v46, 16  ;;  %v990_v7 = vrot.slane %v698_v46, 5  ;;  %v1446_v33 = vld [vmem:[#allocation9 + $0x98] sm:$0xff]  }
 0x169   :  { %v712_v53 = vrot.slane %v710_v48, 5  ;;  %v716_v54 = vrot.slane %v714_v49, 4  ;;  %1331 = vmatprep.mubr.bf16.mxu1 %v1239_v50  ;;  %v1249_v4 = vrot.slane %v979_v29, 9  ;;  %v1450_v40 = vld [vmem:[#allocation9 + $0xb8] sm:$0xff]  }
 0x16a   :  { %v989_v58 = vrot.slane %v987_v51, 4  ;;  %v708_v61 = vrot.slane %v707_v52, 4  ;;  %v722_v3 = vrot.slane %v720_v55, 5  ;;  %v1135_v55 = vsub.s32 3, %v1750_v35 }
 0x16b   :  { %v680_v59 = vld [vmem:[#allocation3 + $0xc] sm:$0xf]  ;;  %v717_v60 = vor.u32 %v716_v54, %v712_v53  ;;  %v988_v14 = vsel %vm1710_vm15, %v1249_v4, %v987_v51  ;;  %v1147_v54 = vsub.s32 4, %v1750_v35 }
 0x16c   :  { %v725_v62 = vshrl.u32 %v680_v59, 16  ;;  %v728_v1 = vshll.u32 %v680_v59, 16  ;;  %v991_v5 = vsel %vm1710_vm15, %v989_v58, %v990_v7  ;;  %v713_v17 = vsel %vm1681_vm11, %v708_v61, %v712_v53  ;;  %v980_v42 = vld [vmem:[#allocation3 + $0xc] sm:$0xe] }
 0x16d   :  { %v718_v2 = vrot.slane %v717_v60, 4  ;;  %v1251_v19 = vcombine.low %v988_v14, %v991_v5  ;;  %v1250_v44 = vrot.slane %v980_v42, 9  ;;  %v1127_v53 = vsub.s32 2, %v1750_v35 }
 0x16e   :  { %v681_v6 = vld [vmem:[#allocation3 + $0x10] sm:$0xf]  ;;  %v727_v8 = vrot.slane %v725_v62, 4  ;;  %v730_v0 = vrot.slane %v728_v1, 5  ;;  %v699_v9 = vld [vmem:[#allocation3 + $0x14] sm:$0x1]  ;;  %v1148_v29 = vrot.slane %v1756_v37, %v1147_v54  ;;  %v1136_v7 = vrot.slane %v1756_v37, %v1135_v55 }
 0x16f   :  { %v734_v10 = vshll.u32 %v681_v6, 16  ;;  %v738_v12 = vshrl.u32 %v681_v6, 16  ;;  %v1240_v13 = vcombine.low %v680_v59, %v681_v6  ;;  %v723_v18 = vsel %vm1681_vm11, %v718_v2, %v722_v3 }
 0x170   :  { %v731_v16 = vor.u32 %v730_v0, %v727_v8  ;;  %v1229_v22 = vcombine.low %v713_v17, %v723_v18  ;;  %v744_v23 = vshll.u32 %v699_v9, 16  ;;  %v994_v39 = vrot.slane %v681_v6, 5 }
 0x171   :  { %v736_v20 = vrot.slane %v734_v10, 5  ;;  %v740_v21 = vrot.slane %v738_v12, 4  ;;  %1332 = vmatmul.mubr.bf16.vlgmr.msra.gmra.mrb[0].mxu1 %v1240_v13  ;;  %v997_v11 = vrot.slane %v699_v9, 5  ;;  %v1128_v58 = vrot.slane %v1756_v37, %v1127_v53 }
 0x172   :  { %1336 = vmatpush3.bf16.msra.mxu1 %v1747_v31  ;;  %1351 = vmatprep.mubr.bf16.mxu1 %v1251_v19  ;;  %v732_v24 = vrot.slane %v731_v16, 4  ;;  %v746_v28 = vrot.slane %v744_v23, 5  ;;  %v1447_v31 = vld [vmem:[#allocation9 + $0xa0] sm:$0xff]   ;;  %v996_v41 = vrot.slane %v994_v39, 4  ;;  %v995_v46 = vsel %vm1710_vm15, %v1250_v44, %v994_v39 }
 0x173   :  { %v741_v25 = vor.u32 %v740_v21, %v736_v20  ;;  %1311 = vmatprep.mubr.bf16.mxu0 %v1229_v22  ;;  %1337 = vmatprep.subr.bf16.mxu1 %v1443_v15  ;;  %v1155_v59 = vsub.s32 5, %v1750_v35  ;;  %v1151_v2 = vmul.f32 %v1148_v29, %v1765_v57  ;;  %v1149_v6 = vmul.f32 %v1148_v29, %v1761_v43 }
 0x174   :  { %v737_v30 = vsel %vm1681_vm11, %v732_v24, %v736_v20  ;;  %v998_v45 = vsel %vm1710_vm15, %v996_v41, %v997_v11  ;;  %v1152_v35 = vmul.f32 %v1148_v29, %v1767_v63  ;;  %v1150_v13 = vmul.f32 %v1148_v29, %v1763_v47 }
 0x175   :  { %v742_v27 = vrot.slane %v741_v25, 4  ;;  %v1252_v48 = vcombine.low %v995_v46, %v998_v45  ;;  %v1156_v8 = vrot.slane %v1756_v37, %v1155_v59 }
 0x176   :  { %1338 = vmatpush3.bf16.msra.mxu1 %v1443_v15 }
 0x177   :  { %1339 = vmatprep.subr.bf16.mxu1 %v1445_v26  ;;  %v747_v32 = vsel %vm1681_vm11, %v742_v27, %v746_v28  ;;  %v1159_v16 = vadd.f32 %v1156_v8, %v1151_v2  ;;  %v1157_v18 = vadd.f32 %v1156_v8, %v1149_v6  ;;  %v1160_v21 = vadd.f32 %v1156_v8, %v1152_v35 }
 0x178   :  { %v1230_v34 = vcombine.low %v737_v30, %v747_v32  ;;  %v1158_v37 = vadd.f32 %v1156_v8, %v1150_v13 }
 0x17a   :  { %1340 = vmatpush3.bf16.msra.mxu1 %v1445_v26  ;;  %1312 = vmatmul.mubr.bf16.vlgmr.msra.gmra.mrb[8].mxu0 %v1230_v34 }
 0x17b   :  { %1341 = vmatprep.subr.bf16.mxu1 %v1446_v33 }
 0x17e   :  { %1342 = vmatpush3.bf16.msra.mxu1 %v1446_v33 }
 0x17f   :  { %1343 = vmatprep.subr.bf16.mxu1 %v1447_v31 }
 0x182   :  { %1344 = vmatpush3.bf16.msra.mxu1 %v1447_v31 }
 0x183   :  { %1345 = vmatprep.subr.bf16.mxu1 %v1448_v36 }
 0x186   :  { %1346 = vmatpush3.bf16.msra.mxu1 %v1448_v36 }
 0x187   :  { %1347 = vmatprep.subr.bf16.mxu1 %v1449_v38 }
 0x18a   :  { %1348 = vmatpush3.bf16.msra.mxu1 %v1449_v38 }
 0x18b   :  { %1349 = vmatprep.subr.bf16.mxu1 %v1450_v40 }
 0x18e   :  { %1350 = vmatpush3.bf16.msra.mxu1 %v1450_v40 }
 0x191   :  { %1352 = vmatmul.mubr.bf16.vlgmr.msra.gmra.mrb[0].mxu1 %v1252_v48 }
 0x24d   :  { %v1313_v49 = vpop.f32.mrb[8].mxu0 }
 0x24e   :  { %v855_v50 = vpop.f32.mrb[9].mxu0 }
 0x24f   :  { %v1314_v51 = vpop.f32.mrb[10].mxu0 }
 0x250   :  { %v858_v52 = vpop.f32.mrb[11].mxu0 }
 0x264   :  { %v1353_v56 = vpop.f32.mrb[0].mxu1 }
 0x265   :  { %v1355_v60 = vadd.f32 %v1353_v56, %v1313_v49  ;;  %v1106_v61 = vpop.f32.mrb[1].mxu1 }
 0x266   :  { %v1356_v62 = vadd.f32 %v1106_v61, %v855_v50  ;;  %v1354_v1 = vpop.f32.mrb[2].mxu1 }
 0x267   :  { %v1131_v3 = vmul.f32 %v1355_v60, %v1128_v58  ;;  %v1357_v4 = vadd.f32 %v1354_v1, %v1314_v51  ;;  %v1109_v5 = vpop.f32.mrb[3].mxu1 }
 0x268   :  { %v1129_v0 = vmul.f32 %v1356_v62, %v1128_v58  ;;  %v1358_v9 = vadd.f32 %v1109_v5, %v858_v52 }
 0x269   :  { %v1139_v10 = vadd.f32 %v1136_v7, %v1131_v3  ;;  %v1132_v12 = vmul.f32 %v1357_v4, %v1128_v58 }
 0x26a   :  { %v1137_v14 = vadd.f32 %v1136_v7, %v1129_v0  ;;  %v1130_v15 = vmul.f32 %v1358_v9, %v1128_v58 }
 0x26b   :  { %v1143_v17 = vmax.f32 %v1139_v10, 0.0  ;;  %v1140_v57 = vadd.f32 %v1136_v7, %v1132_v12 }
 0x26c   :  { %v1141_v19 = vmax.f32 %v1137_v14, 0.0  ;;  %v1138_v20 = vadd.f32 %v1136_v7, %v1130_v15 }
 0x26d   :  { %v1163_v43 = vadd.f32 %v1159_v16, %v1143_v17  ;;  %v1144_v22 = vmax.f32 %v1140_v57, 0.0 }
 0x26e   :  { %v1161_v23 = vadd.f32 %v1157_v18, %v1141_v19  ;;  %v1142_v63 = vmax.f32 %v1138_v20, 0.0 }
 0x26f   :  { %1167 = vst [vmem:[#allocation10 + $0x10] sm:$0xff] %v1163_v43  ;;  %v1164_v24 = vadd.f32 %v1160_v21, %v1144_v22 }
 0x270   :  { %1165 = vst [vmem:[#allocation10] sm:$0xff] %v1161_v23  ;;  %v1162_v47 = vadd.f32 %v1158_v37, %v1142_v63 }
 0x271   :  { %1168 = vst [vmem:[#allocation10 + $0x18] sm:$0xff] %v1164_v24 }
 0x272   :  { %1166 = vst [vmem:[#allocation10 + $0x8] sm:$0xff] %v1162_v47 }
 0x273   :  { %1528 = shalt.err (!%p1525_p0)
}
 0x274   :  { %s1529_s8 = scalar_lea.hbm %s1834_s4, 512 }
 0x275   :  { %p1530_p1 = scmp.ne.s32.totalorder %s1834_s4, %s1529_s8  ;;  %p1533_p2 = scmp.lt.u32.totalorder %s1529_s8, %s1834_s4 }
 0x277   :  { %p1535_p3 = pnand %p1533_p2, %p1530_p1 }
 0x279   :  { %1538 = shalt.err (!%p1535_p3)
}
 0x27a   :  { %1180 = dma.vmem_to_hbm [thread:$0]  %s1175_s30, 512, %s1834_s4, [#allocation6], %s1546_s25, %s1546_s25, %s1547_s26  }
 0x27b   :  { %1543 = dma.done.wait [#allocation6], 512  }
 0x27c   :  { %1544 = vsyncadd [#allocation6], 4294966784 }
 0x27d   :  { %1184 = vsyncpa [#allocation5], 1 }
 0x27e   :  { %1185 = vsyncpa [#allocation8], 1 }
 0x27f   :  { %1186 = vsyncpa [#allocation6], 1 }

</bundles_post_ra>
